<compile_context>
chip_gen: v5e
topology: v5e:2x2
jax: 0.10.0
libtpu: 0.0.40
codegen_flags: <defaults>
</compile_context>

<pallas_src>
import functools

import numpy as np
import jax
import jax.numpy as jnp
from jax.experimental import pallas as pl
from jax.experimental.pallas import tpu as pltpu


@functools.lru_cache(maxsize=None)
def _bicubic_kernel_1d(factor: int = 4, a: float = -0.5):
    """1-D bicubic kernel, identical to BicubicDownSample.__init__ (normalized)."""
    size = factor * 4
    xs = (np.arange(size, dtype=np.float64) - np.floor(size / 2) + 0.5) / factor
    absx = np.abs(xs)
    k = np.where(
        absx <= 1.0,
        (a + 2.0) * absx ** 3 - (a + 3.0) * absx ** 2 + 1.0,
        np.where(
            absx < 2.0,
            a * absx ** 3 - 5.0 * a * absx ** 2 + 8.0 * a * absx - 4.0 * a,
            0.0,
        ),
    )
    k = k / k.sum()
    return k.astype(np.float32)


@functools.lru_cache(maxsize=None)
def _conv_matrix(in_len: int, factor: int, padding: str) -> np.ndarray:
    """(out_len, in_len) matrix applying the strided 1-D bicubic conv along one
    axis with the pad (reflect/replicate) folded into the band weights."""
    size = factor * 4
    stride = factor
    pad = max(size - stride, 0)
    p_lo = pad // 2
    out_len = (in_len + pad - size) // stride + 1
    k = _bicubic_kernel_1d(factor)

    if padding == "reflect" and in_len <= max(p_lo, pad - p_lo):
        raise ValueError("reflect padding requires pad < input size")

    def src(i: int) -> int:  # padded index -> source index
        j = i - p_lo
        if padding == "reflect":
            if j < 0:
                return -j
            if j >= in_len:
                return 2 * (in_len - 1) - j
            return j
        if padding == "replicate":
            return min(max(j, 0), in_len - 1)
        # TODO(synk): other F.pad modes (e.g. 'constant') not implemented.
        raise ValueError(f"unsupported padding mode: {padding}")

    m = np.zeros((out_len, in_len), dtype=np.float32)
    for o in range(out_len):
        base = o * stride
        for t in range(size):
            m[o, src(base + t)] += k[t]
    return m


def _pick_batch(nc, h, w, ho, wo, elem_bytes, budget_bytes, max_batch=32):
    """Largest per-step batch B dividing nc whose working set fits the budget
    and keeps the input block sublane dim (B*H) a multiple of 8."""

    def step_bytes(b):
        x_in = 2 * b * h * w * elem_bytes      # double-buffered input block
        x_val = b * h * w * elem_bytes         # loaded value copy
        t_val = b * h * wo * 4                 # f32 horizontal-conv intermediate
        scr = b * h * wo * elem_bytes          # relayout scratch (compute dtype)
        out = 2 * ho * b * wo * 4              # double-buffered f32 output slab
        return x_in + x_val + t_val + scr + out

    candidates = [
        b for b in range(1, min(nc, max_batch) + 1)
        if nc % b == 0
        and ((b * h) % 8 == 0 or b == nc)      # (8,128) sublane rule for input block
        and step_bytes(b) <= budget_bytes
    ]
    if not candidates:
        # Fall back: full-array block if alignment forces it, else single slice.
        return nc if (h % 8 != 0) else 1
    multi = [b for b in candidates if nc // b >= 2]  # keep >=2 steps for megacore
    pool = multi if multi else candidates
    return max(pool)


def _downsample_kernel(x_ref, wh_ref, wvt_ref, o_ref, t2_ref, *, B, H):
    # x_ref : (B*H, W)  compute dtype
    # wh_ref: (W, Wo);  wvt_ref: (Ho, H)
    # o_ref : (1, Ho, B*Wo) f32;  t2_ref: (H, B*Wo) compute-dtype scratch
    Wo = wh_ref.shape[1]

    # Horizontal conv: one flat matmul over the whole batch block (M = B*H).
    t = jnp.dot(x_ref[...], wh_ref[...],
                preferred_element_type=jnp.float32)          # (B*H, Wo) f32
    tc = t.astype(t2_ref.dtype)

    # Re-layout (B*H, Wo) -> (H, B*Wo) via scratch (static slices only).
    for b in range(B):
        t2_ref[:, b * Wo:(b + 1) * Wo] = tc[b * H:(b + 1) * H, :]

    # Vertical conv: single batched matmul; lane-dense (Ho, B*Wo) output store.
    o_ref[0] = jnp.dot(wvt_ref[...], t2_ref[...],
                       preferred_element_type=jnp.float32).astype(o_ref.dtype)


def bicubic_downsample(x, factor: int = 4, padding: str = "reflect",
                       use_bf16: bool = True,
                       vmem_budget_bytes: int = 24 * 1024 * 1024):
    """Equivalent of BicubicDownSample(factor).forward(x) with default flags.

    x: (N, 3, H, W) float32 NCHW. Returns (N, 3, H//factor, W//factor) float32.
    """
    # TODO(synk): nhwc / clip_round / byte_output flags of forward() not exposed
    # (defaults False in the reference); only the default path is implemented.
    N, C, H, W = x.shape
    wvt_np = _conv_matrix(H, factor, padding)        # (Ho, H)
    wh_np = _conv_matrix(W, factor, padding).T       # (W, Wo)
    Ho = wvt_np.shape[0]
    Wo = wh_np.shape[1]

    cdtype = jnp.bfloat16 if use_bf16 else jnp.float32
    wvt = jnp.asarray(wvt_np, dtype=cdtype)
    wh = jnp.asarray(wh_np, dtype=cdtype)

    NC = N * C
    elem_bytes = 2 if use_bf16 else 4
    B = _pick_batch(NC, H, W, Ho, Wo, elem_bytes, vmem_budget_bytes)
    G = NC // B

    # bf16 cast halves kernel HBM traffic (and MXU passes); f32 accumulation.
    # Flatten to (NC*H, W) so the kernel's horizontal matmul needs no reshape.
    xk = x.astype(cdtype).reshape(NC * H, W)

    cost = pl.CostEstimate(
        flops=2 * NC * H * Wo * (W + Ho),
        transcendentals=0,
        bytes_accessed=NC * H * W * elem_bytes + NC * Ho * Wo * 4
        + (W * Wo + Ho * H) * elem_bytes,
    )

    kernel = functools.partial(_downsample_kernel, B=B, H=H)

    out_slab = pl.pallas_call(
        kernel,
        out_shape=jax.ShapeDtypeStruct((G, Ho, B * Wo), jnp.float32),
        grid=(G,),
        in_specs=[
            pl.BlockSpec((B * H, W), lambda g: (g, 0)),
            pl.BlockSpec((W, Wo), lambda g: (0, 0)),
            pl.BlockSpec((Ho, H), lambda g: (0, 0)),
        ],
        out_specs=pl.BlockSpec((1, Ho, B * Wo), lambda g: (g, 0, 0)),
        scratch_shapes=[pltpu.VMEM((H, B * Wo), cdtype)],
        compiler_params=pltpu.CompilerParams(
            dimension_semantics=("parallel",),
            vmem_limit_bytes=48 * 1024 * 1024,
        ),
        cost_estimate=cost,
    )(xk, wh, wvt)

    # Un-interleave the lane-dense slab: (G, Ho, B, Wo) -> (G, B, Ho, Wo) -> NCHW.
    out = out_slab.reshape(G, Ho, B, Wo).transpose(0, 2, 1, 3)
    return out.reshape(N, C, Ho, Wo)


def _reference_jax(x, factor=4, padding="reflect"):
    """Direct port of the PyTorch forward (default flags) in f32 JAX/XLA."""
    size, stride = factor * 4, factor
    pad = max(size - stride, 0)
    p_lo, p_hi = pad // 2, pad - pad // 2
    k = jnp.asarray(_bicubic_kernel_1d(factor))
    C = x.shape[1]
    k1 = jnp.tile(k.reshape(1, 1, size, 1), (C, 1, 1, 1))
    k2 = jnp.tile(k.reshape(1, 1, 1, size), (C, 1, 1, 1))
    dn = ("NCHW", "OIHW", "NCHW")
    y = jnp.pad(x, ((0, 0), (0, 0), (p_lo, p_hi), (0, 0)), mode=padding)
    y = jax.lax.conv_general_dilated(y, k1, (stride, 1), "VALID",
                                     feature_group_count=C, dimension_numbers=dn)
    y = jnp.pad(y, ((0, 0), (0, 0), (0, 0), (p_lo, p_hi)), mode=padding)
    y = jax.lax.conv_general_dilated(y, k2, (1, stride), "VALID",
                                     feature_group_count=C, dimension_numbers=dn)
    return y


if __name__ == "__main__":
    key = jax.random.PRNGKey(0)
    # groups=3 in the reference module => input must have 3 channels.
    x = jax.random.normal(key, (2, 3, 16, 16), dtype=jnp.float32)

    out = bicubic_downsample(x, factor=4, padding="reflect")
    out = jax.block_until_ready(out)

    assert out.shape == (2, 3, 4, 4), out.shape
    assert out.dtype == jnp.float32

    ref = jax.block_until_ready(_reference_jax(x, factor=4, padding="reflect"))
    err = np.max(np.abs(np.asarray(out) - np.asarray(ref)))
    if not np.allclose(np.asarray(out), np.asarray(ref), atol=3e-2, rtol=3e-2):
        raise SystemExit(f"mismatch vs reference, max abs err = {err}")

    print("KERNEL_OK")
</pallas_src>

<mosaic_0001>
module attributes {stable_mosaic.version = 11 : i64} {
  func.func @_downsample_kernel(%arg0: i32, %arg1: memref<48x16xbf16, #tpu.memory_space<vmem>>, %arg2: memref<16x4xbf16, #tpu.memory_space<vmem>>, %arg3: memref<4x16xbf16, #tpu.memory_space<vmem>>, %arg4: memref<1x4x12xf32, #tpu.memory_space<vmem>>, %arg5: memref<16x12xbf16, #tpu.memory_space<vmem>>) attributes {dimension_semantics = [#tpu.dimension_semantics<parallel>], iteration_bounds = array<i64: 2>, scalar_prefetch = 0 : i64, scratch_operands = 1 : i64, tpu.core_type = #tpu.core_type<tc>, window_params = [{transform_indices = @transform_0, window_bounds = array<i64: 48, 16>}, {pipeline_mode = #tpu.pipeline_mode<synchronous>, transform_indices = @transform_1, window_bounds = array<i64: 16, 4>}, {pipeline_mode = #tpu.pipeline_mode<synchronous>, transform_indices = @transform_2, window_bounds = array<i64: 4, 16>}, {transform_indices = @transform_3, window_bounds = array<i64: 1, 4, 12>}]} {
    %c0 = arith.constant 0 : index
    %c0_0 = arith.constant 0 : index
    %0 = vector.load %arg1[%c0, %c0_0] : memref<48x16xbf16, #tpu.memory_space<vmem>>, vector<48x16xbf16>
    %c0_1 = arith.constant 0 : index
    %c0_2 = arith.constant 0 : index
    %1 = vector.load %arg2[%c0_1, %c0_2] : memref<16x4xbf16, #tpu.memory_space<vmem>>, vector<16x4xbf16>
    %cst = arith.constant dense<0.000000e+00> : vector<48x4xf32>
    %2 = tpu.matmul %0, %1, %cst {dimension_numbers = #tpu.dot_dimension_numbers<[1], [0], [0], [1], [0, 0, 1, 1], [], []>} : vector<48x16xbf16>, vector<16x4xbf16>, vector<48x4xf32> -> vector<48x4xf32>
    %3 = arith.truncf %2 : vector<48x4xf32> to vector<48x4xbf16>
    %4 = vector.extract_strided_slice %3 {offsets = [0, 0], sizes = [16, 4], strides = [1, 1]} : vector<48x4xbf16> to vector<16x4xbf16>
    %c0_3 = arith.constant 0 : index
    %c0_4 = arith.constant 0 : index
    %5 = vector.load %arg5[%c0_3, %c0_4] : memref<16x12xbf16, #tpu.memory_space<vmem>>, vector<16x4xbf16>
    tpu.vector_store %arg5[%c0_3, %c0_4], %4 {strides = array<i32>} : memref<16x12xbf16, #tpu.memory_space<vmem>>, vector<16x4xbf16>,
    %6 = vector.extract_strided_slice %3 {offsets = [16, 0], sizes = [16, 4], strides = [1, 1]} : vector<48x4xbf16> to vector<16x4xbf16>
    %c0_5 = arith.constant 0 : index
    %c4 = arith.constant 4 : index
    %7 = vector.load %arg5[%c0_5, %c4] : memref<16x12xbf16, #tpu.memory_space<vmem>>, vector<16x4xbf16>
    tpu.vector_store %arg5[%c0_5, %c4], %6 {strides = array<i32>} : memref<16x12xbf16, #tpu.memory_space<vmem>>, vector<16x4xbf16>,
    %8 = vector.extract_strided_slice %3 {offsets = [32, 0], sizes = [16, 4], strides = [1, 1]} : vector<48x4xbf16> to vector<16x4xbf16>
    %c0_6 = arith.constant 0 : index
    %c8 = arith.constant 8 : index
    %9 = vector.load %arg5[%c0_6, %c8] : memref<16x12xbf16, #tpu.memory_space<vmem>>, vector<16x4xbf16>
    tpu.vector_store %arg5[%c0_6, %c8], %8 {strides = array<i32>} : memref<16x12xbf16, #tpu.memory_space<vmem>>, vector<16x4xbf16>,
    %c0_7 = arith.constant 0 : index
    %c0_8 = arith.constant 0 : index
    %10 = vector.load %arg3[%c0_7, %c0_8] : memref<4x16xbf16, #tpu.memory_space<vmem>>, vector<4x16xbf16>
    %c0_9 = arith.constant 0 : index
    %c0_10 = arith.constant 0 : index
    %11 = vector.load %arg5[%c0_9, %c0_10] : memref<16x12xbf16, #tpu.memory_space<vmem>>, vector<16x12xbf16>
    %cst_11 = arith.constant dense<0.000000e+00> : vector<4x12xf32>
    %12 = tpu.matmul %10, %11, %cst_11 {dimension_numbers = #tpu.dot_dimension_numbers<[1], [0], [0], [1], [0, 0, 1, 1], [], []>} : vector<4x16xbf16>, vector<16x12xbf16>, vector<4x12xf32> -> vector<4x12xf32>
    %c0_12 = arith.constant 0 : index
    %c0_13 = arith.constant 0 : index
    %c0_14 = arith.constant 0 : index
    %13 = vector.load %arg4[%c0_12, %c0_13, %c0_14] : memref<1x4x12xf32, #tpu.memory_space<vmem>>, vector<1x4x12xf32>
    %14 = vector.shape_cast %13 : vector<1x4x12xf32> to vector<4x12xf32>
    %15 = vector.shape_cast %12 : vector<4x12xf32> to vector<1x4x12xf32>
    tpu.vector_store %arg4[%c0_12, %c0_13, %c0_14], %15 {strides = array<i32>} : memref<1x4x12xf32, #tpu.memory_space<vmem>>, vector<1x4x12xf32>,
    return
  }
  func.func @transform_0(%arg0: i32) -> (i32, i32) {
    %c0_i32 = arith.constant 0 : i32
    %c0_i32_0 = arith.constant 0 : i32
    return %arg0, %c0_i32 : i32, i32
  }
  func.func @transform_1(%arg0: i32) -> (i32, i32) {
    %c0_i32 = arith.constant 0 : i32
    %c0_i32_0 = arith.constant 0 : i32
    %c0_i32_1 = arith.constant 0 : i32
    return %c0_i32, %c0_i32_0 : i32, i32
  }
  func.func @transform_2(%arg0: i32) -> (i32, i32) {
    %c0_i32 = arith.constant 0 : i32
    %c0_i32_0 = arith.constant 0 : i32
    %c0_i32_1 = arith.constant 0 : i32
    return %c0_i32, %c0_i32_0 : i32, i32
  }
  func.func @transform_3(%arg0: i32) -> (i32, i32, i32) {
    %c0_i32 = arith.constant 0 : i32
    %c0_i32_0 = arith.constant 0 : i32
    %c0_i32_1 = arith.constant 0 : i32
    return %arg0, %c0_i32, %c0_i32_0 : i32, i32, i32
  }
}

</mosaic_0001>

<bundles_post_ra>
// kernel: tpu_custom_call.1
= control target key start
LH: loop header
LB: loop body
LE: loop exit
PB: predicated region body
PF: predicated region fallthrough
CT: control target
= control target key end

     0   :  { %8 = vsyncpa [#allocation4], 0  ;;  %s630_s0 = inlined_call_operand.vmem [shape: bf16[96,16], index: 0, kind: input, shape index: {}]   ;;  %s631_s1 = inlined_call_operand.vmem [shape: bf16[16,4], index: 1, kind: input, shape index: {}]   ;;  %s632_s2 = inlined_call_operand.vmem [shape: bf16[4,16], index: 2, kind: input, shape index: {}]   ;;  %s633_s3 = inlined_call_operand.hbm [shape: f32[2,4,12], index: 3, kind: output, shape index: {}]  }
   0x1   :  { %10 = vsyncpa [#allocation4 + $0x1], 0  ;;  %s536_s12 = smov 0   ;;  %s538_s13 = smov 0  }
   0x2   :  { %s540_s14 = smov 0   ;;  %s542_s15 = smov 0  }
   0x3 LB: > { %s557_s16 = sadd.s32 4294967295, %s512_s15   ;;  %s368_s17 = sadd.s32 4294967294, %s512_s15   ;;  %s512_s15 = sphi %s542_s15, %s639_s15   ;;  %s508_s14 = sphi %s540_s14, %s638_s14   ;;  %s504_s13 = sphi %s538_s13, %s637_s13   ;;  %s500_s12 = sphi %s536_s12, %s636_s12  }
   0x4   : > { %s561_s18 = sadd.s32 1, %s512_s15   ;;  %s91_s19 = sadd.s32 1, %s508_s14 }
   0x5   : > { %s88_s20 = ssub.s32 %s512_s15, %s561_s18  ;;  %p101_p0 = scmp.ne.s32.totalorder %s508_s14, %s504_s13 }
   0x6   : > { %p89_p1 = scmp.eq.s32.totalorder %s88_s20, 0  ;;  %p102_p2 = scmp.eq.s32.totalorder %s557_s16, 1 }
   0x7   : > { %p107_p3 = scmp.ne.s32.totalorder %s504_s13, %s500_s12  ;;  %p108_p4 = scmp.eq.s32.totalorder %s368_s17, 1 }
   0x8   : > { %s572_s21 = scalar_select %p89_p1, %s508_s14, %s91_s19  }
   0x9   : > { %p574_p5 = por %p102_p2, %p101_p0  ;;  %p578_p6 = por %p108_p4, %p107_p3 }
   0xa   : > { %p371_p7 = scmp.ge.s32.totalorder %s512_s15, 1  ;;  %p141_p8 = scmp.lt.s32.totalorder %s512_s15, 3 }
   0xc   : > { %p142_p9 = pnand %p371_p7, %p141_p8 }
   0xd   : > { %s165_s26 = smul.u32 (!%p142_p9), 6, %s557_s16  ;;  %s514_s4 = smov (!%p142_p9), 8  }
   0xe   : > { %145 = sbr.rel (%p142_p9) target bundleno = 426 (0x1aa), region = 32  ;;  %s515_s5 = smov (!%p142_p9), 4  }
   0xf   : > { %p166_p10 = scmp.lt.s32.totalorder (!%p142_p9), %s165_s26, 11  ;;  %s162_s8 = sand.u32 (!%p142_p9), 1, %s504_s13  }
  0x10   : > { %s399_s9 = sshll.u32 (!%p142_p9), %s557_s16, 2  ;;  %s372_s10 = sshll.u32 (!%p142_p9), %s162_s8, 2 }
  0x11   : > { %s304_s19 = scalar_lea.hbm (!%p142_p9), %s633_s3, %s399_s9  ;;  %s164_s20 = scalar_lea.vmem (!%p142_p9), [#allocation3], %s372_s10 }
  0x12   : > { %s306_s24 = sshll.u32 (!%p142_p9), %s164_s20, 4  ;;  %s308_s25 = sshll.u32 (!%p142_p9), %s304_s19, 4  ;;  %s307_s24 = int_to_ptr.vmem [resolvable:$true] %s306_s24  ;;  %s309_s25 = int_to_ptr.hbm [resolvable:$true] %s308_s25 }
  0x13   : > { %v405_v0 = vld [vmem:[%s631_s1] sm:$0xff]  ;;  %s641_s26 = smov (!%p166_p10, %s165_s26), 11  ;;  %vm201_vm0 = vcmask 130048   ;;  %vm241_vm1 = vcmask 27648   ;;  %vm252_vm2 = vcmask 60448   ;;  %vm263_vm3 = vcmask 93248  }
  0x14   : > { %407 = vmatpush.bf16.msra.mxu2 %v405_v0  ;;  %408 = vmatpush.bf16.msra.mxu3 %v405_v0  ;;  %s373_s27 = sshll.u32 %s641_s26, 2  ;;  %v266_v21 = vld [vmem:[%s632_s2] sm:$0x3]  ;;  %vm291_vm4 = vcmask 93184   ;;  %s294_s26 = scalar_lea.sflag [#allocation4], %s162_s8 }
  0x15   : > { %218 = vmatpush.bf16.msra.mxu0 %v405_v0  ;;  %s169_s30 = scalar_lea.vmem %s630_s0, %s373_s27  ;;  %s464_s27 = sshra.s32 %s309_s25, 4  ;;  %s465_s27 = int_to_ptr.hbm [resolvable:$true] %s464_s27 }
  0x16   : > { %v403_v1 = vld [vmem:[%s169_s30 + $0x8] sm:$0xff]  ;;  %v404_v2 = vld [vmem:[%s169_s30 + $0x10] sm:$0xff]  ;;  %v402_v3 = vld [vmem:[%s169_s30] sm:$0xff]  ;;  %s466_s28 = scalar_lea.hbm %s465_s27, 4  ;;  %s470_s30 = scalar_lea.hbm %s633_s3, 8 }
  0x17   : > { %391 = vmatmul.msk.bf16.vlgmr.msra.gmra.mxu2 %vm201_vm0, %v403_v1  ;;  %392 = vmatmul.msk.bf16.vlgmr.msra.gmra.mxu3 %vm201_vm0, %v404_v2  ;;  %p467_p11 = scmp.ne.s32.totalorder %s465_s27, %s466_s28  ;;  %p471_p0 = scmp.lt.s32.totalorder %s465_s27, %s633_s3 }
  0x18   : > { %390 = vmatmul.msk.bf16.vlgmr.msra.gmra.mxu0 %vm201_vm0, %v402_v3  ;;  %p472_p1 = scmp.lt.s32.totalorder %s470_s30, %s466_s28 }
  0x19   : > { %p468_p12 = pnand %p467_p11, %p574_p5 }
  0x1a   : > { %p473_p2 = por %p472_p1, %p471_p0 }
  0x1b   : > { %p469_p13 = pneg %p468_p12 }
  0x1d   : > { %p474_p3 = pnand %p473_p2, %p469_p13 }
  0x95   : > { %v220_v4 = vpop.f32.mrf.mxu0 }
  0x96   : > { %v235_v5 = vpack.c.bf16 %v220_v4, %v220_v4 }
  0x98   : > { %242 = vst.msk [vmem:[#allocation2] sm:$0xf] %vm241_vm1, %v235_v5 }
  0x9a   : > { %v225_v6 = vpop.f32.mrf.mxu2  ;;  %v230_v7 = vpop.f32.mrf.mxu3 }
  0x9b   : > { %v237_v8 = vpack.c.bf16 %v225_v6, %v225_v6  ;;  %v239_v9 = vpack.c.bf16 %v230_v7, %v230_v7 }
  0x9d   : > { %257 = vrot.lane.b32.xlu1 %v239_v9, %s514_s4  ;;  %246 = vrot.lane.b32.xlu0 %v237_v8, %s515_s5  ;;  %v222_v10 = vpop.f32.mrf.mxu0 }
  0x9e   : > { %v236_v11 = vpack.c.bf16 %v222_v10, %v222_v10 }
  0xa0   : > { %243 = vst.msk [vmem:[#allocation2 + $0x4] sm:$0xf] %vm241_vm1, %v236_v11 }
  0xa2   : > { %v227_v12 = vpop.f32.mrf.mxu2  ;;  %v232_v13 = vpop.f32.mrf.mxu3 }
  0xa3   : > { %v238_v14 = vpack.c.bf16 %v227_v12, %v227_v12  ;;  %v240_v15 = vpack.c.bf16 %v232_v13, %v232_v13 }
  0xa5   : > { %259 = vrot.lane.b32.xlu1 %v240_v15, %s514_s4  ;;  %248 = vrot.lane.b32.xlu0 %v238_v14, %s515_s5 }
 0x10f   : > { %v258_v16 = vpop.permute.xlu1 %257  ;;  %v247_v17 = vpop.permute.xlu0 %246 }
 0x110   : > { %253 = vst.msk [vmem:[#allocation2] sm:$0xf] %vm252_vm2, %v247_v17 }
 0x111   : > { %264 = vst.msk [vmem:[#allocation2] sm:$0xf] %vm263_vm3, %v258_v16 }
 0x117   : > { %v260_v18 = vpop.permute.xlu1 %259  ;;  %v249_v19 = vpop.permute.xlu0 %248 }
 0x118   : > { %254 = vst.msk [vmem:[#allocation2 + $0x4] sm:$0xf] %vm252_vm2, %v249_v19 }
 0x119   : > { %265 = vst.msk [vmem:[#allocation2 + $0x4] sm:$0xf] %vm263_vm3, %v260_v18 }
 0x120   : > { %v406_v20 = vld [vmem:[#allocation2] sm:$0xff] }
 0x121   : > { %285 = vmatpush.bf16.msra.mxu1 %v406_v20 }
 0x124   : > { %397 = vmatmul.msk.bf16.vlgmr.msra.gmra.mxu1 %vm201_vm0, %v266_v21 }
 0x1a1   : > { %v287_v22 = vpop.f32.mrf.mxu1 }
 0x1a2   : > { %292 = vst.msk [vmem:[%s164_s20] sm:$0xf] %vm291_vm4, %v287_v22 }
 0x1a3   : > { %477 = shalt.err (!%p474_p3)
}
 0x1a4   : > { %409 = dma.vmem_to_hbm [thread:$0]  (%p574_p5), %s307_s24, 64, %s309_s25, %s294_s26  }
 0x1a9   : > { %v289_v23 = vpop.f32.mrf.mxu1 }
 0x1aa PF: > { %p415_p4 = scmp.ge.s32.totalorder %s512_s15, 2  ;;  %s320_s6 = sand.u32 1, %s500_s12  }
 0x1ab   : > { %s321_s7 = scalar_lea.sflag [#allocation4], %s320_s6 }
 0x1ac   : > { %p412_p7 = pnand %p415_p4, %p578_p6 }
 0x1ae   : > { %p413_p8 = pneg %p412_p7 }
 0x1b0   : > { %495 = dma.done.wait (%p413_p8), %s321_s7, 64  }
 0x1b1   : > { %497 = vsyncadd (%p413_p8), %s321_s7, 4294967232  ;;  %p13_p9 = scmp.ge.s32.totalorder %s561_s18, 4   ;;  %s636_s12 = smov %s504_s13 }
 0x1b2   : > { %s637_s13 = smov %s508_s14  ;;  %s638_s14 = smov %s572_s21 }
 0x1b3   : > { %s639_s15 = smov %s561_s18  ;;  %15 = sbr.rel (!%p13_p9) target bundleno = 3 (0x3), region = 67 }
 0x1b8   :  { %327 = vsyncpa [#allocation4], 1 }
 0x1b9   :  { %329 = vsyncpa [#allocation4 + $0x1], 1 }

</bundles_post_ra>
